<compile_context>
chip_gen: v7x
topology: tpu7x:2x2x1
jax: 0.10.0
libtpu: 0.0.40
codegen_flags: <defaults>
</compile_context>

<pallas_src>
import jax
import jax.numpy as jnp
from jax.experimental import pallas as pl
from jax.experimental.pallas import tpu as pltpu


def _round_up(n, m):
    return ((n + m - 1) // m) * m


def _ae_kernel(x_ref,
               w_e1, b_e1, w_e2, b_e2, w_e3, b_e3, w_z, b_z,
               w_d1, b_d1, w_d2, b_d2, w_d3, b_d3, w_x, b_x,
               xbar_ref, z_ref):
    def linear(h, w_ref, b_ref):
        b = b_ref[...]                                      # f32 bias, loaded once
        acc = jnp.dot(h.astype(jnp.bfloat16), w_ref[...],
                      preferred_element_type=jnp.float32)   # bf16 MXU, f32 acc
        return acc + b                                      # f32 epilogue

    def relu(h):
        return jnp.maximum(h, 0.0)

    x = x_ref[...]
    h = relu(linear(x, w_e1, b_e1))
    h = relu(linear(h, w_e2, b_e2))
    h = relu(linear(h, w_e3, b_e3))
    z = linear(h, w_z, b_z)                 # no ReLU on z
    h = relu(linear(z, w_d1, b_d1))
    h = relu(linear(h, w_d2, b_d2))
    h = relu(linear(h, w_d3, b_d3))
    x_bar = linear(h, w_x, b_x)             # no ReLU on x_bar

    xbar_ref[...] = x_bar.astype(xbar_ref.dtype)
    z_ref[...] = z.astype(z_ref.dtype)


def ae_forward(x, params, *, tile_b=None, lane=128):
    """x: (B, n_input) f32. params: list of (W_t, b_row) pairs, W_t is (in, out).

    Returns (x_bar (B, n_input) f32, z (B, n_z) f32).
    """
    B, n_input = x.shape
    n_z = params[3][0].shape[1]
    assert B % 8 == 0, "batch must be a multiple of 8 (f32 sublane)"

    if tile_b is None:
        # Explicit batch tile: prefer multiples of 16 (bf16 sublane tile),
        # <=512 rows, and >=2 grid steps (pipelining + v7x megacore sharding).
        def pick(step):
            cands = [t for t in range(step, min(B, 512) + 1, step) if B % t == 0]
            if not cands:
                return None
            multi = [t for t in cands if B // t >= 2]
            return max(multi) if multi else max(cands)
        tile_b = pick(16) or pick(8) or B
    assert tile_b % 8 == 0, "tile_b must be a multiple of 8"
    assert B % tile_b == 0, "tile_b must divide B"

    pad_in = _round_up(n_input, lane)
    pad_z = _round_up(n_z, lane)

    # bf16 input tiles only when the sublane block matches the bf16 native
    # tiling (16); otherwise keep f32 to stay layout-safe.  Values fed to the
    # MXU are identical either way (the kernel casts to bf16 at the dot).
    x_dtype = jnp.bfloat16 if tile_b % 16 == 0 else jnp.float32

    # Zero-pad x features to a lane multiple; cast fuses into the pad op.
    x_p = jnp.pad(x, ((0, 0), (0, pad_in - n_input))).astype(x_dtype)

    # Zero-pad + bf16-cast weights once in the wrapper; biases stay f32.
    flat = []
    for w, b in params:
        fi, fo = w.shape
        fi_p, fo_p = _round_up(fi, lane), _round_up(fo, lane)
        w_p = jnp.pad(w, ((0, fi_p - fi), (0, fo_p - fo))).astype(jnp.bfloat16)
        b_p = jnp.pad(b, ((0, 0), (0, fo_p - fo))).astype(jnp.float32)
        flat.append(w_p)
        flat.append(b_p)

    # Weights/biases: full-array blocks with a constant index_map -> DMA'd once
    # and resident in VMEM across all batch tiles.
    # NOTE: at large scale (esp. v7x 64 MiB VMEM) consider
    #       pipeline_mode=pl.Buffered(1) here to avoid double-buffering
    #       constant-index resident weights.
    def resident_spec(arr):
        return pl.BlockSpec(arr.shape, lambda i: (0, 0))

    in_specs = [pl.BlockSpec((tile_b, pad_in), lambda i: (i, 0))]
    in_specs += [resident_spec(a) for a in flat]

    out_specs = (
        pl.BlockSpec((tile_b, pad_in), lambda i: (i, 0)),   # x_bar (lane-dense)
        pl.BlockSpec((tile_b, pad_z), lambda i: (i, 0)),    # z     (lane-dense)
    )
    out_shape = (
        jax.ShapeDtypeStruct((B, pad_in), jnp.float32),
        jax.ShapeDtypeStruct((B, pad_z), jnp.float32),
    )

    # Scheduler hints for XLA around the custom call.
    flops = sum(2 * B * flat[2 * i].shape[0] * flat[2 * i].shape[1]
                for i in range(len(params)))
    bytes_accessed = (int(x_p.size) * x_p.dtype.itemsize
                      + sum(int(a.size) * a.dtype.itemsize for a in flat)
                      + B * pad_in * 4 + B * pad_z * 4)

    grid_spec = pl.GridSpec(
        grid=(B // tile_b,),
        in_specs=in_specs,
        out_specs=out_specs,
    )

    x_bar_p, z_p = pl.pallas_call(
        _ae_kernel,
        grid_spec=grid_spec,
        out_shape=out_shape,
        compiler_params=pltpu.CompilerParams(
            dimension_semantics=("parallel",)),
        cost_estimate=pl.CostEstimate(flops=flops, transcendentals=0,
                                      bytes_accessed=bytes_accessed),
    )(x_p, *flat)

    # Slice padded lanes back to the true feature widths.
    return x_bar_p[:, :n_input], z_p[:, :n_z]


def init_ae_params(key, n_enc_1, n_enc_2, n_enc_3,
                   n_dec_1, n_dec_2, n_dec_3, n_input, n_z):
    """Deterministic init mimicking torch.nn.Linear (uniform +/- 1/sqrt(fan_in)).

    Returns list of (W_transposed (in, out), bias (1, out)) in forward order.
    """
    dims = [
        (n_input, n_enc_1),   # enc_1
        (n_enc_1, n_enc_2),   # enc_2
        (n_enc_2, n_enc_3),   # enc_3
        (n_enc_3, n_z),       # z_layer
        (n_z, n_dec_1),       # dec_1
        (n_dec_1, n_dec_2),   # dec_2
        (n_dec_2, n_dec_3),   # dec_3
        (n_dec_3, n_input),   # x_bar_layer
    ]
    params = []
    for (fan_in, fan_out) in dims:
        key, kw, kb = jax.random.split(key, 3)
        bound = 1.0 / jnp.sqrt(jnp.float32(fan_in))
        w = jax.random.uniform(kw, (fan_in, fan_out), jnp.float32, -bound, bound)
        b = jax.random.uniform(kb, (1, fan_out), jnp.float32, -bound, bound)
        params.append((w, b))
    return params


def ae_reference(x, params):
    """Pure-JAX f32 reference matching the PyTorch forward."""
    def lin(h, p):
        w, b = p
        return h @ w + b
    h = jax.nn.relu(lin(x, params[0]))
    h = jax.nn.relu(lin(h, params[1]))
    h = jax.nn.relu(lin(h, params[2]))
    z = lin(h, params[3])
    h = jax.nn.relu(lin(z, params[4]))
    h = jax.nn.relu(lin(h, params[5]))
    h = jax.nn.relu(lin(h, params[6]))
    x_bar = lin(h, params[7])
    return x_bar, z


if __name__ == "__main__":
    # Small shapes consistent with the AE module; B chosen so the grid has
    # multiple batch tiles (pipelining + v7x megacore).
    B = 64
    n_input = 32
    n_enc_1, n_enc_2, n_enc_3 = 64, 64, 32
    n_dec_1, n_dec_2, n_dec_3 = 32, 64, 64
    n_z = 8

    key = jax.random.PRNGKey(0)
    key, kx = jax.random.split(key)
    x = jax.random.normal(kx, (B, n_input), jnp.float32)

    params = init_ae_params(key, n_enc_1, n_enc_2, n_enc_3,
                            n_dec_1, n_dec_2, n_dec_3, n_input, n_z)

    # tile_b=16 -> 4 grid steps even at this toy batch size, bf16 x tiles.
    x_bar, z = ae_forward(x, params, tile_b=16)
    jax.block_until_ready((x_bar, z))

    # Correctness check against the pure-JAX f32 reference (kernel uses bf16
    # MXU operands with f32 accumulation -> slightly looser tolerance).
    x_bar_ref, z_ref = ae_reference(x, params)
    assert x_bar.shape == (B, n_input) and z.shape == (B, n_z)
    assert jnp.allclose(x_bar, x_bar_ref, atol=5e-2, rtol=5e-2)
    assert jnp.allclose(z, z_ref, atol=5e-2, rtol=5e-2)

    print("KERNEL_OK")
</pallas_src>

<mosaic_0001>
module attributes {stable_mosaic.version = 11 : i64} {
  func.func @_ae_kernel(%arg0: i32, %arg1: memref<16x128xbf16, #tpu.memory_space<vmem>>, %arg2: memref<128x128xbf16, #tpu.memory_space<vmem>>, %arg3: memref<1x128xf32, #tpu.memory_space<vmem>>, %arg4: memref<128x128xbf16, #tpu.memory_space<vmem>>, %arg5: memref<1x128xf32, #tpu.memory_space<vmem>>, %arg6: memref<128x128xbf16, #tpu.memory_space<vmem>>, %arg7: memref<1x128xf32, #tpu.memory_space<vmem>>, %arg8: memref<128x128xbf16, #tpu.memory_space<vmem>>, %arg9: memref<1x128xf32, #tpu.memory_space<vmem>>, %arg10: memref<128x128xbf16, #tpu.memory_space<vmem>>, %arg11: memref<1x128xf32, #tpu.memory_space<vmem>>, %arg12: memref<128x128xbf16, #tpu.memory_space<vmem>>, %arg13: memref<1x128xf32, #tpu.memory_space<vmem>>, %arg14: memref<128x128xbf16, #tpu.memory_space<vmem>>, %arg15: memref<1x128xf32, #tpu.memory_space<vmem>>, %arg16: memref<128x128xbf16, #tpu.memory_space<vmem>>, %arg17: memref<1x128xf32, #tpu.memory_space<vmem>>, %arg18: memref<16x128xf32, #tpu.memory_space<vmem>>, %arg19: memref<16x128xf32, #tpu.memory_space<vmem>>) attributes {dimension_semantics = [#tpu.dimension_semantics<parallel>], iteration_bounds = array<i64: 4>, scalar_prefetch = 0 : i64, scratch_operands = 0 : i64, tpu.core_type = #tpu.core_type<tc>, window_params = [{transform_indices = @transform_0, window_bounds = array<i64: 16, 128>}, {pipeline_mode = #tpu.pipeline_mode<synchronous>, transform_indices = @transform_1, window_bounds = array<i64: 128, 128>}, {pipeline_mode = #tpu.pipeline_mode<synchronous>, transform_indices = @transform_2, window_bounds = array<i64: 1, 128>}, {pipeline_mode = #tpu.pipeline_mode<synchronous>, transform_indices = @transform_3, window_bounds = array<i64: 128, 128>}, {pipeline_mode = #tpu.pipeline_mode<synchronous>, transform_indices = @transform_4, window_bounds = array<i64: 1, 128>}, {pipeline_mode = #tpu.pipeline_mode<synchronous>, transform_indices = @transform_5, window_bounds = array<i64: 128, 128>}, {pipeline_mode = #tpu.pipeline_mode<synchronous>, transform_indices = @transform_6, window_bounds = array<i64: 1, 128>}, {pipeline_mode = #tpu.pipeline_mode<synchronous>, transform_indices = @transform_7, window_bounds = array<i64: 128, 128>}, {pipeline_mode = #tpu.pipeline_mode<synchronous>, transform_indices = @transform_8, window_bounds = array<i64: 1, 128>}, {pipeline_mode = #tpu.pipeline_mode<synchronous>, transform_indices = @transform_9, window_bounds = array<i64: 128, 128>}, {pipeline_mode = #tpu.pipeline_mode<synchronous>, transform_indices = @transform_10, window_bounds = array<i64: 1, 128>}, {pipeline_mode = #tpu.pipeline_mode<synchronous>, transform_indices = @transform_11, window_bounds = array<i64: 128, 128>}, {pipeline_mode = #tpu.pipeline_mode<synchronous>, transform_indices = @transform_12, window_bounds = array<i64: 1, 128>}, {pipeline_mode = #tpu.pipeline_mode<synchronous>, transform_indices = @transform_13, window_bounds = array<i64: 128, 128>}, {pipeline_mode = #tpu.pipeline_mode<synchronous>, transform_indices = @transform_14, window_bounds = array<i64: 1, 128>}, {pipeline_mode = #tpu.pipeline_mode<synchronous>, transform_indices = @transform_15, window_bounds = array<i64: 128, 128>}, {pipeline_mode = #tpu.pipeline_mode<synchronous>, transform_indices = @transform_16, window_bounds = array<i64: 1, 128>}, {transform_indices = @transform_17, window_bounds = array<i64: 16, 128>}, {transform_indices = @transform_18, window_bounds = array<i64: 16, 128>}]} {
    %c0 = arith.constant 0 : index
    %c0_0 = arith.constant 0 : index
    %0 = vector.load %arg1[%c0, %c0_0] : memref<16x128xbf16, #tpu.memory_space<vmem>>, vector<16x128xbf16>
    %c0_1 = arith.constant 0 : index
    %c0_2 = arith.constant 0 : index
    %1 = vector.load %arg3[%c0_1, %c0_2] : memref<1x128xf32, #tpu.memory_space<vmem>>, vector<1x128xf32>
    %c0_3 = arith.constant 0 : index
    %c0_4 = arith.constant 0 : index
    %2 = vector.load %arg2[%c0_3, %c0_4] : memref<128x128xbf16, #tpu.memory_space<vmem>>, vector<128x128xbf16>
    %cst = arith.constant dense<0.000000e+00> : vector<16x128xf32>
    %3 = tpu.matmul %0, %2, %cst {dimension_numbers = #tpu.dot_dimension_numbers<[1], [0], [0], [1], [0, 0, 1, 1], [], []>} : vector<16x128xbf16>, vector<128x128xbf16>, vector<16x128xf32> -> vector<16x128xf32>
    %4 = vector.broadcast %1 : vector<1x128xf32> to vector<16x128xf32>
    %5 = arith.addf %3, %4 : vector<16x128xf32>
    %cst_5 = arith.constant 0.000000e+00 : f32
    %6 = vector.broadcast %cst_5 : f32 to vector<16x128xf32>
    %7 = arith.maximumf %5, %6 : vector<16x128xf32>
    %c0_6 = arith.constant 0 : index
    %c0_7 = arith.constant 0 : index
    %8 = vector.load %arg5[%c0_6, %c0_7] : memref<1x128xf32, #tpu.memory_space<vmem>>, vector<1x128xf32>
    %9 = arith.truncf %7 : vector<16x128xf32> to vector<16x128xbf16>
    %c0_8 = arith.constant 0 : index
    %c0_9 = arith.constant 0 : index
    %10 = vector.load %arg4[%c0_8, %c0_9] : memref<128x128xbf16, #tpu.memory_space<vmem>>, vector<128x128xbf16>
    %cst_10 = arith.constant dense<0.000000e+00> : vector<16x128xf32>
    %11 = tpu.matmul %9, %10, %cst_10 {dimension_numbers = #tpu.dot_dimension_numbers<[1], [0], [0], [1], [0, 0, 1, 1], [], []>} : vector<16x128xbf16>, vector<128x128xbf16>, vector<16x128xf32> -> vector<16x128xf32>
    %12 = vector.broadcast %8 : vector<1x128xf32> to vector<16x128xf32>
    %13 = arith.addf %11, %12 : vector<16x128xf32>
    %cst_11 = arith.constant 0.000000e+00 : f32
    %14 = vector.broadcast %cst_11 : f32 to vector<16x128xf32>
    %15 = arith.maximumf %13, %14 : vector<16x128xf32>
    %c0_12 = arith.constant 0 : index
    %c0_13 = arith.constant 0 : index
    %16 = vector.load %arg7[%c0_12, %c0_13] : memref<1x128xf32, #tpu.memory_space<vmem>>, vector<1x128xf32>
    %17 = arith.truncf %15 : vector<16x128xf32> to vector<16x128xbf16>
    %c0_14 = arith.constant 0 : index
    %c0_15 = arith.constant 0 : index
    %18 = vector.load %arg6[%c0_14, %c0_15] : memref<128x128xbf16, #tpu.memory_space<vmem>>, vector<128x128xbf16>
    %cst_16 = arith.constant dense<0.000000e+00> : vector<16x128xf32>
    %19 = tpu.matmul %17, %18, %cst_16 {dimension_numbers = #tpu.dot_dimension_numbers<[1], [0], [0], [1], [0, 0, 1, 1], [], []>} : vector<16x128xbf16>, vector<128x128xbf16>, vector<16x128xf32> -> vector<16x128xf32>
    %20 = vector.broadcast %16 : vector<1x128xf32> to vector<16x128xf32>
    %21 = arith.addf %19, %20 : vector<16x128xf32>
    %cst_17 = arith.constant 0.000000e+00 : f32
    %22 = vector.broadcast %cst_17 : f32 to vector<16x128xf32>
    %23 = arith.maximumf %21, %22 : vector<16x128xf32>
    %c0_18 = arith.constant 0 : index
    %c0_19 = arith.constant 0 : index
    %24 = vector.load %arg9[%c0_18, %c0_19] : memref<1x128xf32, #tpu.memory_space<vmem>>, vector<1x128xf32>
    %25 = arith.truncf %23 : vector<16x128xf32> to vector<16x128xbf16>
    %c0_20 = arith.constant 0 : index
    %c0_21 = arith.constant 0 : index
    %26 = vector.load %arg8[%c0_20, %c0_21] : memref<128x128xbf16, #tpu.memory_space<vmem>>, vector<128x128xbf16>
    %cst_22 = arith.constant dense<0.000000e+00> : vector<16x128xf32>
    %27 = tpu.matmul %25, %26, %cst_22 {dimension_numbers = #tpu.dot_dimension_numbers<[1], [0], [0], [1], [0, 0, 1, 1], [], []>} : vector<16x128xbf16>, vector<128x128xbf16>, vector<16x128xf32> -> vector<16x128xf32>
    %28 = vector.broadcast %24 : vector<1x128xf32> to vector<16x128xf32>
    %29 = arith.addf %27, %28 : vector<16x128xf32>
    %c0_23 = arith.constant 0 : index
    %c0_24 = arith.constant 0 : index
    %30 = vector.load %arg11[%c0_23, %c0_24] : memref<1x128xf32, #tpu.memory_space<vmem>>, vector<1x128xf32>
    %31 = arith.truncf %29 : vector<16x128xf32> to vector<16x128xbf16>
    %c0_25 = arith.constant 0 : index
    %c0_26 = arith.constant 0 : index
    %32 = vector.load %arg10[%c0_25, %c0_26] : memref<128x128xbf16, #tpu.memory_space<vmem>>, vector<128x128xbf16>
    %cst_27 = arith.constant dense<0.000000e+00> : vector<16x128xf32>
    %33 = tpu.matmul %31, %32, %cst_27 {dimension_numbers = #tpu.dot_dimension_numbers<[1], [0], [0], [1], [0, 0, 1, 1], [], []>} : vector<16x128xbf16>, vector<128x128xbf16>, vector<16x128xf32> -> vector<16x128xf32>
    %34 = vector.broadcast %30 : vector<1x128xf32> to vector<16x128xf32>
    %35 = arith.addf %33, %34 : vector<16x128xf32>
    %cst_28 = arith.constant 0.000000e+00 : f32
    %36 = vector.broadcast %cst_28 : f32 to vector<16x128xf32>
    %37 = arith.maximumf %35, %36 : vector<16x128xf32>
    %c0_29 = arith.constant 0 : index
    %c0_30 = arith.constant 0 : index
    %38 = vector.load %arg13[%c0_29, %c0_30] : memref<1x128xf32, #tpu.memory_space<vmem>>, vector<1x128xf32>
    %39 = arith.truncf %37 : vector<16x128xf32> to vector<16x128xbf16>
    %c0_31 = arith.constant 0 : index
    %c0_32 = arith.constant 0 : index
    %40 = vector.load %arg12[%c0_31, %c0_32] : memref<128x128xbf16, #tpu.memory_space<vmem>>, vector<128x128xbf16>
    %cst_33 = arith.constant dense<0.000000e+00> : vector<16x128xf32>
    %41 = tpu.matmul %39, %40, %cst_33 {dimension_numbers = #tpu.dot_dimension_numbers<[1], [0], [0], [1], [0, 0, 1, 1], [], []>} : vector<16x128xbf16>, vector<128x128xbf16>, vector<16x128xf32> -> vector<16x128xf32>
    %42 = vector.broadcast %38 : vector<1x128xf32> to vector<16x128xf32>
    %43 = arith.addf %41, %42 : vector<16x128xf32>
    %cst_34 = arith.constant 0.000000e+00 : f32
    %44 = vector.broadcast %cst_34 : f32 to vector<16x128xf32>
    %45 = arith.maximumf %43, %44 : vector<16x128xf32>
    %c0_35 = arith.constant 0 : index
    %c0_36 = arith.constant 0 : index
    %46 = vector.load %arg15[%c0_35, %c0_36] : memref<1x128xf32, #tpu.memory_space<vmem>>, vector<1x128xf32>
    %47 = arith.truncf %45 : vector<16x128xf32> to vector<16x128xbf16>
    %c0_37 = arith.constant 0 : index
    %c0_38 = arith.constant 0 : index
    %48 = vector.load %arg14[%c0_37, %c0_38] : memref<128x128xbf16, #tpu.memory_space<vmem>>, vector<128x128xbf16>
    %cst_39 = arith.constant dense<0.000000e+00> : vector<16x128xf32>
    %49 = tpu.matmul %47, %48, %cst_39 {dimension_numbers = #tpu.dot_dimension_numbers<[1], [0], [0], [1], [0, 0, 1, 1], [], []>} : vector<16x128xbf16>, vector<128x128xbf16>, vector<16x128xf32> -> vector<16x128xf32>
    %50 = vector.broadcast %46 : vector<1x128xf32> to vector<16x128xf32>
    %51 = arith.addf %49, %50 : vector<16x128xf32>
    %cst_40 = arith.constant 0.000000e+00 : f32
    %52 = vector.broadcast %cst_40 : f32 to vector<16x128xf32>
    %53 = arith.maximumf %51, %52 : vector<16x128xf32>
    %c0_41 = arith.constant 0 : index
    %c0_42 = arith.constant 0 : index
    %54 = vector.load %arg17[%c0_41, %c0_42] : memref<1x128xf32, #tpu.memory_space<vmem>>, vector<1x128xf32>
    %55 = arith.truncf %53 : vector<16x128xf32> to vector<16x128xbf16>
    %c0_43 = arith.constant 0 : index
    %c0_44 = arith.constant 0 : index
    %56 = vector.load %arg16[%c0_43, %c0_44] : memref<128x128xbf16, #tpu.memory_space<vmem>>, vector<128x128xbf16>
    %cst_45 = arith.constant dense<0.000000e+00> : vector<16x128xf32>
    %57 = tpu.matmul %55, %56, %cst_45 {dimension_numbers = #tpu.dot_dimension_numbers<[1], [0], [0], [1], [0, 0, 1, 1], [], []>} : vector<16x128xbf16>, vector<128x128xbf16>, vector<16x128xf32> -> vector<16x128xf32>
    %58 = vector.broadcast %54 : vector<1x128xf32> to vector<16x128xf32>
    %59 = arith.addf %57, %58 : vector<16x128xf32>
    %c0_46 = arith.constant 0 : index
    %c0_47 = arith.constant 0 : index
    %60 = vector.load %arg18[%c0_46, %c0_47] : memref<16x128xf32, #tpu.memory_space<vmem>>, vector<16x128xf32>
    tpu.vector_store %arg18[%c0_46, %c0_47], %59 {strides = array<i32>} : memref<16x128xf32, #tpu.memory_space<vmem>>, vector<16x128xf32>,
    %c0_48 = arith.constant 0 : index
    %c0_49 = arith.constant 0 : index
    %61 = vector.load %arg19[%c0_48, %c0_49] : memref<16x128xf32, #tpu.memory_space<vmem>>, vector<16x128xf32>
    tpu.vector_store %arg19[%c0_48, %c0_49], %29 {strides = array<i32>} : memref<16x128xf32, #tpu.memory_space<vmem>>, vector<16x128xf32>,
    return
  }
  func.func @transform_0(%arg0: i32) -> (i32, i32) {
    %c0_i32 = arith.constant 0 : i32
    %c0_i32_0 = arith.constant 0 : i32
    return %arg0, %c0_i32 : i32, i32
  }
  func.func @transform_1(%arg0: i32) -> (i32, i32) {
    %c0_i32 = arith.constant 0 : i32
    %c0_i32_0 = arith.constant 0 : i32
    %c0_i32_1 = arith.constant 0 : i32
    return %c0_i32, %c0_i32_0 : i32, i32
  }
  func.func @transform_2(%arg0: i32) -> (i32, i32) {
    %c0_i32 = arith.constant 0 : i32
    %c0_i32_0 = arith.constant 0 : i32
    %c0_i32_1 = arith.constant 0 : i32
    return %c0_i32, %c0_i32_0 : i32, i32
  }
  func.func @transform_3(%arg0: i32) -> (i32, i32) {
    %c0_i32 = arith.constant 0 : i32
    %c0_i32_0 = arith.constant 0 : i32
    %c0_i32_1 = arith.constant 0 : i32
    return %c0_i32, %c0_i32_0 : i32, i32
  }
  func.func @transform_4(%arg0: i32) -> (i32, i32) {
    %c0_i32 = arith.constant 0 : i32
    %c0_i32_0 = arith.constant 0 : i32
    %c0_i32_1 = arith.constant 0 : i32
    return %c0_i32, %c0_i32_0 : i32, i32
  }
  func.func @transform_5(%arg0: i32) -> (i32, i32) {
    %c0_i32 = arith.constant 0 : i32
    %c0_i32_0 = arith.constant 0 : i32
    %c0_i32_1 = arith.constant 0 : i32
    return %c0_i32, %c0_i32_0 : i32, i32
  }
  func.func @transform_6(%arg0: i32) -> (i32, i32) {
    %c0_i32 = arith.constant 0 : i32
    %c0_i32_0 = arith.constant 0 : i32
    %c0_i32_1 = arith.constant 0 : i32
    return %c0_i32, %c0_i32_0 : i32, i32
  }
  func.func @transform_7(%arg0: i32) -> (i32, i32) {
    %c0_i32 = arith.constant 0 : i32
    %c0_i32_0 = arith.constant 0 : i32
    %c0_i32_1 = arith.constant 0 : i32
    return %c0_i32, %c0_i32_0 : i32, i32
  }
  func.func @transform_8(%arg0: i32) -> (i32, i32) {
    %c0_i32 = arith.constant 0 : i32
    %c0_i32_0 = arith.constant 0 : i32
    %c0_i32_1 = arith.constant 0 : i32
    return %c0_i32, %c0_i32_0 : i32, i32
  }
  func.func @transform_9(%arg0: i32) -> (i32, i32) {
    %c0_i32 = arith.constant 0 : i32
    %c0_i32_0 = arith.constant 0 : i32
    %c0_i32_1 = arith.constant 0 : i32
    return %c0_i32, %c0_i32_0 : i32, i32
  }
  func.func @transform_10(%arg0: i32) -> (i32, i32) {
    %c0_i32 = arith.constant 0 : i32
    %c0_i32_0 = arith.constant 0 : i32
    %c0_i32_1 = arith.constant 0 : i32
    return %c0_i32, %c0_i32_0 : i32, i32
  }
  func.func @transform_11(%arg0: i32) -> (i32, i32) {
    %c0_i32 = arith.constant 0 : i32
    %c0_i32_0 = arith.constant 0 : i32
    %c0_i32_1 = arith.constant 0 : i32
    return %c0_i32, %c0_i32_0 : i32, i32
  }
  func.func @transform_12(%arg0: i32) -> (i32, i32) {
    %c0_i32 = arith.constant 0 : i32
    %c0_i32_0 = arith.constant 0 : i32
    %c0_i32_1 = arith.constant 0 : i32
    return %c0_i32, %c0_i32_0 : i32, i32
  }
  func.func @transform_13(%arg0: i32) -> (i32, i32) {
    %c0_i32 = arith.constant 0 : i32
    %c0_i32_0 = arith.constant 0 : i32
    %c0_i32_1 = arith.constant 0 : i32
    return %c0_i32, %c0_i32_0 : i32, i32
  }
  func.func @transform_14(%arg0: i32) -> (i32, i32) {
    %c0_i32 = arith.constant 0 : i32
    %c0_i32_0 = arith.constant 0 : i32
    %c0_i32_1 = arith.constant 0 : i32
    return %c0_i32, %c0_i32_0 : i32, i32
  }
  func.func @transform_15(%arg0: i32) -> (i32, i32) {
    %c0_i32 = arith.constant 0 : i32
    %c0_i32_0 = arith.constant 0 : i32
    %c0_i32_1 = arith.constant 0 : i32
    return %c0_i32, %c0_i32_0 : i32, i32
  }
  func.func @transform_16(%arg0: i32) -> (i32, i32) {
    %c0_i32 = arith.constant 0 : i32
    %c0_i32_0 = arith.constant 0 : i32
    %c0_i32_1 = arith.constant 0 : i32
    return %c0_i32, %c0_i32_0 : i32, i32
  }
  func.func @transform_17(%arg0: i32) -> (i32, i32) {
    %c0_i32 = arith.constant 0 : i32
    %c0_i32_0 = arith.constant 0 : i32
    return %arg0, %c0_i32 : i32, i32
  }
  func.func @transform_18(%arg0: i32) -> (i32, i32) {
    %c0_i32 = arith.constant 0 : i32
    %c0_i32_0 = arith.constant 0 : i32
    return %arg0, %c0_i32 : i32, i32
  }
}

</mosaic_0001>

<bundles_post_ra>
// kernel: tpu_custom_call.1
= control target key start
LH: loop header
LB: loop body
LE: loop exit
PB: predicated region body
PF: predicated region fallthrough
CT: control target
= control target key end

     0   :  { %s3443_s0 = inlined_call_operand.hbm [shape: bf16[64,128], index: 0, kind: input, shape index: {}]   ;;  %s3444_s1 = inlined_call_operand.hbm [shape: bf16[128,128], index: 1, kind: input, shape index: {}]   ;;  %s3445_s2 = inlined_call_operand.vmem [shape: f32[1,128], index: 2, kind: input, shape index: {}]   ;;  %s3446_s3 = inlined_call_operand.hbm [shape: bf16[128,128], index: 3, kind: input, shape index: {}]   ;;  %s3447_s4 = inlined_call_operand.vmem [shape: f32[1,128], index: 4, kind: input, shape index: {}]   ;;  %s3448_s5 = inlined_call_operand.hbm [shape: bf16[128,128], index: 5, kind: input, shape index: {}]   ;;  %s3449_s6 = inlined_call_operand.vmem [shape: f32[1,128], index: 6, kind: input, shape index: {}]   ;;  %s3450_s7 = inlined_call_operand.hbm [shape: bf16[128,128], index: 7, kind: input, shape index: {}]   ;;  %s3451_s8 = inlined_call_operand.vmem [shape: f32[1,128], index: 8, kind: input, shape index: {}]   ;;  %s3452_s9 = inlined_call_operand.hbm [shape: bf16[128,128], index: 9, kind: input, shape index: {}]   ;;  %s3453_s10 = inlined_call_operand.vmem [shape: f32[1,128], index: 10, kind: input, shape index: {}]   ;;  %s3454_s11 = inlined_call_operand.hbm [shape: bf16[128,128], index: 11, kind: input, shape index: {}]   ;;  %s3455_s12 = inlined_call_operand.vmem [shape: f32[1,128], index: 12, kind: input, shape index: {}]   ;;  %s3456_s13 = inlined_call_operand.hbm [shape: bf16[128,128], index: 13, kind: input, shape index: {}]   ;;  %s3457_s14 = inlined_call_operand.vmem [shape: f32[1,128], index: 14, kind: input, shape index: {}]   ;;  %s3458_s15 = inlined_call_operand.hbm [shape: bf16[128,128], index: 15, kind: input, shape index: {}]   ;;  %s3459_s16 = inlined_call_operand.vmem [shape: f32[1,128], index: 16, kind: input, shape index: {}]   ;;  %s3460_s17 = inlined_call_operand.hbm [shape: f32[64,128], index: 17, kind: output, shape index: {0}]   ;;  %s3461_s18 = inlined_call_operand.hbm [shape: f32[64,128], index: 18, kind: output, shape index: {1}]  }
   0x1   :  { %3476 = sst [smem:[#allocation27_spill]] %s3443_s0 }
   0x2   :  { %3477 = sst [smem:[#allocation28_spill]] %s3444_s1 }
   0x3   :  { %3478 = sst [smem:[#allocation29_spill]] %s3445_s2 }
   0x4   :  { %3479 = sst [smem:[#allocation30_spill]] %s3446_s3 }
   0x5   :  { %3480 = sst [smem:[#allocation31_spill]] %s3449_s6 }
   0x6   :  { %3481 = sst [smem:[#allocation32_spill]] %s3451_s8 }
   0x7   :  { %3482 = sst [smem:[#allocation33_spill]] %s3453_s10 }
   0x8   :  { %3483 = sst [smem:[#allocation34_spill]] %s3455_s12 }
   0x9   :  { %3484 = sst [smem:[#allocation35_spill]] %s3457_s14 }
   0xa   :  { %3485 = sst [smem:[#allocation36_spill]] %s3459_s16 }
   0xb   :  { %3486 = sst [smem:[#allocation37_spill]] %s3460_s17 }
   0xc   :  { %3487 = sst [smem:[#allocation38_spill]] %s3461_s18 }
   0xd   :  { %24 = vsyncpa [#allocation3], 0 }
   0xe   :  { %26 = vsyncpa [#allocation3 + $0x1], 0 }
   0xf   :  { %27 = vsyncpa [#allocation6], 0 }
  0x10   :  { %28 = vsyncpa [#allocation9], 0 }
  0x11   :  { %29 = vsyncpa [#allocation12], 0 }
  0x12   :  { %30 = vsyncpa [#allocation15], 0 }
  0x13   :  { %31 = vsyncpa [#allocation4], 0 }
  0x14   :  { %33 = vsyncpa [#allocation4 + $0x1], 0 }
  0x15   :  { %34 = vsyncpa [#allocation19], 0 }
  0x16   :  { %36 = vsyncpa [#allocation19 + $0x1], 0  ;;  %s2895_s27 = smov 0   ;;  %s2897_s28 = smov 0  }
  0x17   :  { %s2899_s29 = smov 0   ;;  %s2901_s30 = smov 0  }
  0x18 LB: > { %s2783_s0 = smov [#allocation5]   ;;  %s2916_s1 = sadd.s32 4294967295, %s2781_s30   ;;  %s2781_s30 = sphi %s2901_s30, %s3529_s30   ;;  %s2777_s29 = sphi %s2899_s29, %s3528_s29   ;;  %s2773_s28 = sphi %s2897_s28, %s3527_s28   ;;  %s2769_s27 = sphi %s2895_s27, %s3526_s27  }
  0x19   : > { %s473_s19 = sshll.u32 %s2783_s0, 4  ;;  %p1869_p0 = scmp.ge.s32.totalorder %s2781_s30, 1  ;;  %s2921_s19 = int_to_ptr.vmem [resolvable:$true] %s473_s19 }
  0x1a   : > { %p3467_p1 = scmp.eq.s32.totalorder %s2916_s1, 0  ;;  %p461_p2 = scmp.lt.s32.totalorder %s2781_s30, 5 }
  0x1b   : > { %s2784_s21 = smov [#allocation8]   ;;  %s2785_s23 = smov [#allocation11]  }
  0x1c   : > { %p2923_p3 = pnand %p1869_p0, %p461_p2  ;;  %s505_s22 = sshll.u32 %s2784_s21, 4  ;;  %s2935_s22 = int_to_ptr.vmem [resolvable:$true] %s505_s22 }
  0x1d   : > { %s537_s24 = sshll.u32 %s2785_s23, 4  ;;  %s3490_s0 = sld [smem:[#allocation28_spill]]  ;;  %s2937_s24 = int_to_ptr.vmem [resolvable:$true] %s537_s24 }
  0x1e   : > { %s3488_s20 = scalar_select %p2923_p3, 1, 0 }
  0x1f   : > { %p2248_p4 = pneg %p2923_p3 }
  0x21   : > { %p2931_p5 = pnand %p2248_p4, %p3467_p1 }
  0x23   : > { %s2413_s17 = scalar_lea.hbm %s3490_s0, 1024  ;;  %p2947_p7 = pneg %p2931_p5 }
  0x24   : > { %p2414_p6 = scmp.ne.s32.totalorder %s3490_s0, %s2413_s17  ;;  %p2420_p10 = scmp.lt.u32.totalorder %s2413_s17, %s3490_s0 }
  0x26   : > { %p2416_p8 = pnand %p2947_p7, %p2414_p6 }
  0x28   : > { %p2417_p9 = pneg %p2416_p8 }
  0x2a   : > { %p2422_p11 = pnand %p2420_p10, %p2417_p9 }
  0x2c   : > { %2425 = shalt.err (!%p2422_p11)
}
  0x2d   : > { %s2426_s16 = scalar_lea.vmem %s2921_s19, 1024  ;;  %p2434_p2 = scmp.lt.s32.totalorder %s2921_s19, %s2921_s19 }
  0x2e   : > { %p2427_p12 = scmp.ne.s32.totalorder %s2921_s19, %s2426_s16  ;;  %p2435_p4 = scmp.lt.s32.totalorder %s2426_s16, %s2426_s16 }
  0x30   : > { %p2429_p13 = pnand %p2427_p12, %p2947_p7  ;;  %p2436_p6 = por %p2435_p4, %p2434_p2 }
  0x32   : > { %p2430_p0 = pneg %p2429_p13 }
  0x34   : > { %p2437_p8 = pnand %p2436_p6, %p2430_p0 }
  0x36   : > { %2440 = shalt.err (!%p2437_p8)
}
  0x37   : > { %s3469_s18 = smov 64   ;;  %s3470_s14 = smov 4  }
  0x38   : > { %2251 = dma.hbm_to_vmem [thread:$0]  (!%p2931_p5), %s3490_s0, 1024, %s2921_s19, [#allocation6], %s3469_s18, %s3469_s18, %s3470_s14  }
  0x39   : > { %s2441_s16 = scalar_lea.hbm %s3448_s5, 1024 }
  0x3a   : > { %p2442_p9 = scmp.ne.s32.totalorder %s3448_s5, %s2441_s16  ;;  %p2448_p12 = scmp.lt.u32.totalorder %s2441_s16, %s3448_s5 }
  0x3c   : > { %p2444_p10 = pnand %p2442_p9, %p2947_p7 }
  0x3e   : > { %p2445_p11 = pneg %p2444_p10 }
  0x40   : > { %p2450_p13 = pnand %p2448_p12, %p2445_p11 }
  0x42   : > { %2453 = shalt.err (!%p2450_p13)
}
  0x43   : > { %s2454_s19 = scalar_lea.vmem %s2935_s22, 1024  ;;  %p2462_p6 = scmp.lt.s32.totalorder %s2935_s22, %s2935_s22 }
  0x44   : > { %p2455_p0 = scmp.ne.s32.totalorder %s2935_s22, %s2454_s19  ;;  %p2463_p8 = scmp.lt.s32.totalorder %s2454_s19, %s2454_s19 }
  0x46   : > { %p2457_p2 = pnand %p2455_p0, %p2947_p7  ;;  %p2464_p9 = por %p2463_p8, %p2462_p6 }
  0x48   : > { %p2458_p4 = pneg %p2457_p2 }
  0x4a   : > { %p2465_p10 = pnand %p2464_p9, %p2458_p4 }
  0x4c   : > { %2468 = shalt.err (!%p2465_p10)
}
  0x4d   : > { %2257 = dma.hbm_to_vmem [thread:$0]  (!%p2931_p5), %s3448_s5, 1024, %s2935_s22, [#allocation9], %s3469_s18, %s3469_s18, %s3470_s14  }
  0x4e   : > { %s2469_s17 = scalar_lea.hbm %s3452_s9, 1024 }
  0x4f   : > { %p2470_p11 = scmp.ne.s32.totalorder %s3452_s9, %s2469_s17  ;;  %p2476_p0 = scmp.lt.u32.totalorder %s2469_s17, %s3452_s9 }
  0x51   : > { %p2472_p12 = pnand %p2470_p11, %p2947_p7 }
  0x53   : > { %p2473_p13 = pneg %p2472_p12 }
  0x55   : > { %p2478_p2 = pnand %p2476_p0, %p2473_p13 }
  0x57   : > { %2481 = shalt.err (!%p2478_p2)
}
  0x58   : > { %s2482_s22 = scalar_lea.vmem %s2937_s24, 1024  ;;  %p2490_p9 = scmp.lt.s32.totalorder %s2937_s24, %s2937_s24 }
  0x59   : > { %p2483_p4 = scmp.ne.s32.totalorder %s2937_s24, %s2482_s22  ;;  %p2491_p10 = scmp.lt.s32.totalorder %s2482_s22, %s2482_s22 }
  0x5b   : > { %p2485_p6 = pnand %p2483_p4, %p2947_p7  ;;  %p2492_p11 = por %p2491_p10, %p2490_p9 }
  0x5d   : > { %p2486_p8 = pneg %p2485_p6 }
  0x5f   : > { %p2493_p12 = pnand %p2492_p11, %p2486_p8 }
  0x61   : > { %2496 = shalt.err (!%p2493_p12)
}
  0x62   : > { %2263 = dma.hbm_to_vmem [thread:$0]  (!%p2931_p5), %s3452_s9, 1024, %s2937_s24, [#allocation12], %s3469_s18, %s3469_s18, %s3470_s14  }
  0x63   : > { %s2788_s8 = smov [#allocation14]   ;;  %s2789_s12 = smov [#allocation7]  }
  0x64   : > { %s569_s10 = sshll.u32 %s2788_s8, 4  ;;  %s489_s17 = sshll.u32 %s2789_s12, 4  ;;  %s570_s10 = int_to_ptr.vmem [resolvable:$true] %s569_s10  ;;  %s490_s17 = int_to_ptr.vmem [resolvable:$true] %s489_s17 }
  0x65   : > { %s2497_s23 = scalar_lea.hbm %s3456_s13, 1024 }
  0x66   : > { %p2498_p13 = scmp.ne.s32.totalorder %s3456_s13, %s2497_s23  ;;  %p2504_p4 = scmp.lt.u32.totalorder %s2497_s23, %s3456_s13 }
  0x68   : > { %p2500_p0 = pnand %p2498_p13, %p2947_p7 }
  0x6a   : > { %p2501_p2 = pneg %p2500_p0 }
  0x6c   : > { %p2506_p6 = pnand %p2504_p4, %p2501_p2 }
  0x6e   : > { %2509 = shalt.err (!%p2506_p6)
}
  0x6f   : > { %s2510_s24 = scalar_lea.vmem %s570_s10, 1024  ;;  %p2518_p11 = scmp.lt.s32.totalorder %s570_s10, %s570_s10 }
  0x70   : > { %p2511_p8 = scmp.ne.s32.totalorder %s570_s10, %s2510_s24  ;;  %p2519_p12 = scmp.lt.s32.totalorder %s2510_s24, %s2510_s24 }
  0x72   : > { %p2513_p9 = pnand %p2511_p8, %p2947_p7  ;;  %p2520_p1 = por %p2519_p12, %p2518_p11 }
  0x74   : > { %p2514_p10 = pneg %p2513_p9 }
  0x76   : > { %p2521_p3 = pnand %p2520_p1, %p2514_p10 }
  0x78   : > { %2524 = shalt.err (!%p2521_p3)
}
  0x79   : > { %2269 = dma.hbm_to_vmem [thread:$0]  (!%p2931_p5), %s3456_s13, 1024, %s570_s10, [#allocation15], %s3469_s18, %s3469_s18, %s3470_s14  }
  0x7a   : > { %s3492_s3 = sld [smem:[#allocation30_spill]] }
  0x80   : > { %s2525_s25 = scalar_lea.hbm %s3492_s3, 1024 }
  0x81   : > { %p2526_p1 = scmp.ne.s32.totalorder %s3492_s3, %s2525_s25  ;;  %p2532_p0 = scmp.lt.u32.totalorder %s2525_s25, %s3492_s3 }
  0x83   : > { %p2528_p3 = pnand %p2526_p1, %p2947_p7 }
  0x85   : > { %p2529_p13 = pneg %p2528_p3 }
  0x87   : > { %p2534_p2 = pnand %p2532_p0, %p2529_p13 }
  0x89   : > { %2537 = shalt.err (!%p2534_p2)
}
  0x8a   : > { %s2538_s19 = scalar_lea.vmem %s490_s17, 1024  ;;  %p2546_p9 = scmp.lt.s32.totalorder %s490_s17, %s490_s17 }
  0x8b   : > { %p2539_p4 = scmp.ne.s32.totalorder %s490_s17, %s2538_s19  ;;  %p2547_p10 = scmp.lt.s32.totalorder %s2538_s19, %s2538_s19 }
  0x8d   : > { %p2541_p6 = pnand %p2539_p4, %p2947_p7  ;;  %p2548_p11 = por %p2547_p10, %p2546_p9 }
  0x8f   : > { %p2542_p8 = pneg %p2541_p6 }
  0x91   : > { %p2549_p12 = pnand %p2548_p11, %p2542_p8 }
  0x93   : > { %2552 = shalt.err (!%p2549_p12)
}
  0x94   : > { %2254 = dma.hbm_to_vmem [thread:$0]  (!%p2931_p5), %s3492_s3, 1024, %s490_s17, [#allocation6], %s3469_s18, %s3469_s18, %s3470_s14  }
  0x95   : > { %s2790_s0 = smov [#allocation10]   ;;  %s2791_s8 = smov [#allocation13]  }
  0x96   : > { %s521_s6 = sshll.u32 %s2790_s0, 4  ;;  %s553_s12 = sshll.u32 %s2791_s8, 4  ;;  %s522_s6 = int_to_ptr.vmem [resolvable:$true] %s521_s6  ;;  %s554_s12 = int_to_ptr.vmem [resolvable:$true] %s553_s12 }
  0x97   : > { %s2553_s23 = scalar_lea.hbm %s3450_s7, 1024 }
  0x98   : > { %p2554_p1 = scmp.ne.s32.totalorder %s3450_s7, %s2553_s23  ;;  %p2560_p0 = scmp.lt.u32.totalorder %s2553_s23, %s3450_s7 }
  0x9a   : > { %p2556_p3 = pnand %p2554_p1, %p2947_p7 }
  0x9c   : > { %p2557_p13 = pneg %p2556_p3 }
  0x9e   : > { %p2562_p2 = pnand %p2560_p0, %p2557_p13 }
  0xa0   : > { %2565 = shalt.err (!%p2562_p2)
}
  0xa1   : > { %s2566_s17 = scalar_lea.vmem %s522_s6, 1024  ;;  %p2574_p9 = scmp.lt.s32.totalorder %s522_s6, %s522_s6 }
  0xa2   : > { %p2567_p4 = scmp.ne.s32.totalorder %s522_s6, %s2566_s17  ;;  %p2575_p10 = scmp.lt.s32.totalorder %s2566_s17, %s2566_s17 }
  0xa4   : > { %p2569_p6 = pnand %p2567_p4, %p2947_p7  ;;  %p2576_p11 = por %p2575_p10, %p2574_p9 }
  0xa6   : > { %p2570_p8 = pneg %p2569_p6 }
  0xa8   : > { %p2577_p12 = pnand %p2576_p11, %p2570_p8 }
  0xaa   : > { %2580 = shalt.err (!%p2577_p12)
}
  0xab   : > { %2260 = dma.hbm_to_vmem [thread:$0]  (!%p2931_p5), %s3450_s7, 1024, %s522_s6, [#allocation9], %s3469_s18, %s3469_s18, %s3470_s14  }
  0xac   : > { %s2581_s26 = scalar_lea.hbm %s3454_s11, 1024 }
  0xad   : > { %p2582_p1 = scmp.ne.s32.totalorder %s3454_s11, %s2581_s26  ;;  %p2588_p0 = scmp.lt.u32.totalorder %s2581_s26, %s3454_s11 }
  0xaf   : > { %p2584_p3 = pnand %p2582_p1, %p2947_p7 }
  0xb1   : > { %p2585_p13 = pneg %p2584_p3 }
  0xb3   : > { %p2590_p2 = pnand %p2588_p0, %p2585_p13 }
  0xb5   : > { %2593 = shalt.err (!%p2590_p2)
}
  0xb6   : > { %s2594_s10 = scalar_lea.vmem %s554_s12, 1024  ;;  %p2602_p9 = scmp.lt.s32.totalorder %s554_s12, %s554_s12 }
  0xb7   : > { %p2595_p4 = scmp.ne.s32.totalorder %s554_s12, %s2594_s10  ;;  %p2603_p10 = scmp.lt.s32.totalorder %s2594_s10, %s2594_s10 }
  0xb9   : > { %p2597_p6 = pnand %p2595_p4, %p2947_p7  ;;  %p2604_p11 = por %p2603_p10, %p2602_p9 }
  0xbb   : > { %p2598_p8 = pneg %p2597_p6 }
  0xbd   : > { %p2605_p12 = pnand %p2604_p11, %p2598_p8 }
  0xbf   : > { %2608 = shalt.err (!%p2605_p12)
}
  0xc0   : > { %2266 = dma.hbm_to_vmem [thread:$0]  (!%p2931_p5), %s3454_s11, 1024, %s554_s12, [#allocation12], %s3469_s18, %s3469_s18, %s3470_s14  }
  0xc1   : > { %s2792_s24 = smov [#allocation16]   ;;  %s2609_s26 = scalar_lea.hbm %s3458_s15, 1024 }
  0xc2   : > { %s585_s0 = sshll.u32 %s2792_s24, 4  ;;  %p2610_p1 = scmp.ne.s32.totalorder %s3458_s15, %s2609_s26  ;;  %s586_s0 = int_to_ptr.vmem [resolvable:$true] %s585_s0 }
  0xc3   : > { %p2616_p0 = scmp.lt.u32.totalorder %s2609_s26, %s3458_s15 }
  0xc4   : > { %p2612_p3 = pnand %p2610_p1, %p2947_p7 }
  0xc6   : > { %p2613_p13 = pneg %p2612_p3 }
  0xc8   : > { %p2618_p2 = pnand %p2616_p0, %p2613_p13 }
  0xca   : > { %2621 = shalt.err (!%p2618_p2)
}
  0xcb   : > { %s2622_s12 = scalar_lea.vmem %s586_s0, 1024  ;;  %p2630_p9 = scmp.lt.s32.totalorder %s586_s0, %s586_s0 }
  0xcc   : > { %p2623_p4 = scmp.ne.s32.totalorder %s586_s0, %s2622_s12  ;;  %p2631_p10 = scmp.lt.s32.totalorder %s2622_s12, %s2622_s12 }
  0xce   : > { %p2625_p6 = pnand %p2623_p4, %p2947_p7  ;;  %p2632_p11 = por %p2631_p10, %p2630_p9 }
  0xd0   : > { %p2626_p8 = pneg %p2625_p6 }
  0xd2   : > { %p2633_p12 = pnand %p2632_p11, %p2626_p8 }
  0xd4   : > { %2636 = shalt.err (!%p2633_p12)
}
  0xd5   : > { %2272 = dma.hbm_to_vmem [thread:$0]  (!%p2931_p5), %s3458_s15, 1024, %s586_s0, [#allocation15], %s3469_s18, %s3469_s18, %s3470_s14  }
  0xd6   : > { %s1868_s2 = sadd.s32 4294967294, %s2781_s30   ;;  %s3130_s21 = sadd.s32 1, %s2781_s30  }
  0xd7   : > { %s46_s17 = ssub.s32 %s2781_s30, %s3130_s21  ;;  %s49_s24 = sadd.s32 1, %s2777_s29 }
  0xd8   : > { %p47_p7 = scmp.eq.s32.totalorder %s46_s17, 0  ;;  %p56_p1 = scmp.ne.s32.totalorder %s2777_s29, %s2773_s28 }
  0xd9   : > { %p57_p3 = scmp.eq.s32.totalorder %s2781_s30, 0  ;;  %p62_p13 = scmp.ne.s32.totalorder %s2773_s28, %s2769_s27 }
  0xda   : > { %s3141_s8 = scalar_select %p47_p7, %s2777_s29, %s49_s24  }
  0xdb   : > { %p3143_p0 = por %p57_p3, %p56_p1  ;;  %p3494_p2 = scmp.eq.s32.totalorder %s2916_s1, 0 }
  0xdc   : > { %p422_p4 = scmp.eq.s32.totalorder %s2916_s1, 3  ;;  %p428_p6 = scmp.eq.s32.totalorder %s1868_s2, 3 }
  0xdd   : > { %p3149_p5 = por %p3494_p2, %p62_p13  ;;  %p2292_p8 = scmp.lt.s32.totalorder %s2781_s30, 4 }
  0xde   : > { %s602_s26 = sand.u32 1, %s2777_s29   ;;  %p3156_p9 = por %p422_p4, %p56_p1 }
  0xdf   : > { %p3160_p10 = por %p428_p6, %p62_p13  ;;  %s1879_s22 = sshll.u32 %s602_s26, 3 }
  0xe0   : > { %s3496_s23 = scalar_select %p3156_p9, 1, 0 }
  0xe1   : > { %s3497_s16 = scalar_select %p3160_p10, 1, 0 }
  0xe2   : > { %s1975_s19 = sshll.u32 %s2781_s30, 7  ;;  %s3498_s6 = sld [smem:[#allocation27_spill]] }
  0xe3   : > { %s606_s2 = scalar_lea.vmem [#allocation2], %s1879_s22  ;;  %p3174_p11 = pnand %p2292_p8, %p3143_p0 }
  0xe4   : > { %s613_s24 = sshll.u32 %s606_s2, 4  ;;  %s3178_s14 = scalar_lea.sflag [#allocation3], %s602_s26  ;;  %s3170_s24 = int_to_ptr.vmem [resolvable:$true] %s613_s24 }
  0xe5   : > { %p2639_p7 = pneg %p3174_p11 }
  0xe8   : > { %s3168_s17 = scalar_lea.hbm %s3498_s6, %s1975_s19  ;;  %s2642_s25 = scalar_lea.hbm %s3498_s6, 512 }
  0xe9   : > { %s2637_s12 = scalar_lea.hbm %s3168_s17, 128  ;;  %p2643_p13 = scmp.lt.u32.totalorder %s3168_s17, %s3498_s6 }
  0xea   : > { %p2638_p12 = scmp.ne.s32.totalorder %s3168_s17, %s2637_s12  ;;  %p2644_p0 = scmp.lt.u32.totalorder %s2642_s25, %s2637_s12 }
  0xeb   : > { %p2646_p4 = scmp.lt.u32.totalorder %s2637_s12, %s3168_s17 }
  0xec   : > { %p2640_p1 = pnand %p2639_p7, %p2638_p12  ;;  %p2645_p2 = por %p2644_p0, %p2643_p13 }
  0xee   : > { %p2641_p3 = pneg %p2640_p1  ;;  %p2647_p6 = por %p2646_p4, %p2645_p2 }
  0xf0   : > { %p2648_p8 = pnand %p2647_p6, %p2641_p3 }
  0xf2   : > { %2651 = shalt.err (!%p2648_p8)
}
  0xf3   : > { %s2652_s26 = scalar_lea.vmem %s3170_s24, 128  ;;  %s2793_s22 = smov [#allocation2]  }
  0xf4   : > { %p2653_p12 = scmp.ne.s32.totalorder %s3170_s24, %s2652_s26  ;;  %s2657_s19 = sshll.u32 %s2793_s22, 4  ;;  %s2658_s19 = int_to_ptr.vmem [resolvable:$false] %s2657_s19 }
  0xf5   : > { %s2659_s10 = scalar_lea.vmem %s2658_s19, 256  ;;  %p2660_p9 = scmp.lt.s32.totalorder %s3170_s24, %s2658_s19 }
  0xf6   : > { %p2655_p1 = pnand %p2653_p12, %p2639_p7  ;;  %p2661_p13 = scmp.lt.s32.totalorder %s2659_s10, %s2652_s26 }
  0xf8   : > { %p2656_p10 = pneg %p2655_p1  ;;  %p2662_p0 = por %p2661_p13, %p2660_p9 }
  0xfa   : > { %p2663_p2 = pnand %p2662_p0, %p2656_p10 }
  0xfc   : > { %2666 = shalt.err (!%p2663_p2)
}
  0xfd   : > { %s3500_s12 = smov 4   ;;  %s3501_s25 = smov 64  }
  0xfe   : > { %2276 = dma.hbm_to_vmem [thread:$0]  (!%p3174_p11), %s3168_s17, 128, %s3170_s24, %s3178_s14, %s3501_s25, %s3501_s25, %s3500_s12  }
  0xff   : > { %p3502_p7 = scmp.ne.s32.totalorder %s3488_s20, 0 }
 0x100   : > { %s3212_s2 = sand.u32 (!%p3502_p7), 1, %s2773_s28  }
 0x101   : > { %625 = sbr.rel (%p3502_p7) target bundleno = 2081 (0x821), region = 88  ;;  %s1883_s26 = sshll.u32 (!%p3502_p7), %s3212_s2, 3 }
 0x102   : > { %s628_s22 = scalar_lea.sflag (!%p3502_p7), [#allocation3], %s3212_s2  ;;  %s3216_s19 = scalar_lea.vmem (!%p3502_p7), [#allocation2], %s1883_s26 }
 0x108   : > { %2740 = dma.done.wait (%p3149_p5), %s628_s22, 128  }
 0x109   : > { %2742 = vsyncadd (%p3149_p5), %s628_s22, 4294967168  ;;  %p3503_p9 = scmp.eq.s32.totalorder %s2916_s1, 0 }
 0x10b   : > { %2744 = dma.done.wait (%p3503_p9), [#allocation6], 2048   ;;  %p3504_p10 = pmov %p3503_p9 }
 0x10c   : > { %p3505_p11 = pmov %p3503_p9 }
 0x10d   : > { %2746 = vsyncadd (%p3504_p10), [#allocation6], 4294965248 }
 0x10e   : > { %2748 = dma.done.wait (%p3505_p11), [#allocation9], 2048   ;;  %p3506_p3 = pmov %p3503_p9 }
 0x110   : > { %2750 = vsyncadd (%p3506_p3), [#allocation9], 4294965248  ;;  %p3507_p4 = pmov %p3506_p3 }
 0x111   : > { %p3508_p6 = pmov %p3506_p3 }
 0x112   : > { %2752 = dma.done.wait (%p3507_p4), [#allocation12], 2048  }
 0x113   : > { %2754 = vsyncadd (%p3508_p6), [#allocation12], 4294965248  ;;  %p3509_p5 = pmov %p3506_p3 }
 0x114   : > { %p3510_p8 = pmov %p3506_p3 }
 0x115   : > { %2756 = dma.done.wait (%p3509_p5), [#allocation15], 2048  }
 0x116   : > { %2758 = vsyncadd (%p3510_p8), [#allocation15], 4294965248  ;;  %v2794_v0 = vmov 0.0   ;;  %vm2795_vm0 = vmmov 0   ;;  %v2348_v1 = vld [vmem:[#allocation5] sm:$0xff]   ;;  %v2349_v2 = vld [vmem:[#allocation5 + $0x8] sm:$0xff]  }
 0x117   : > { %2050 = vmatprep.subr.bf16.mxu0 %v2794_v0  ;;  %2066 = vmatprep.mubr.msk.bf16.mxu0 %vm2795_vm0, %v2794_v0  ;;  %v2350_v3 = vld [vmem:[#allocation5 + $0x10] sm:$0xff]   ;;  %v2357_v4 = vld [vmem:[#allocation7] sm:$0xff]   ;;  %v2351_v5 = vld [vmem:[#allocation5 + $0x18] sm:$0xff]   ;;  %s3511_s14 = sld [smem:[#allocation29_spill]]  ;;  %s3512_s12 = sld [smem:[#allocation31_spill]] }
 0x118   : > { %2070 = vmatprep.subr.bf16.mxu1 %v2794_v0  ;;  %2086 = vmatprep.mubr.msk.bf16.mxu1 %vm2795_vm0, %v2794_v0  ;;  %v2358_v6 = vld [vmem:[#allocation7 + $0x8] sm:$0xff]   ;;  %v2352_v7 = vld [vmem:[#allocation5 + $0x20] sm:$0xff]   ;;  %v2359_v8 = vld [vmem:[#allocation7 + $0x10] sm:$0xff]   ;;  %s3473_s25 = sshll.u32 %s3212_s2, 4  ;;  %s3514_s0 = sld [smem:[#allocation33_spill]] }
 0x119   : > { %2051 = vmatpush3.bf16.msra.mxu0 %v2348_v1  ;;  %2071 = vmatpush3.bf16.msra.mxu1 %v2357_v4  ;;  %v2353_v9 = vld [vmem:[#allocation5 + $0x28] sm:$0xff]   ;;  %v2360_v10 = vld [vmem:[#allocation7 + $0x18] sm:$0xff]   ;;  %v2354_v11 = vld [vmem:[#allocation5 + $0x30] sm:$0xff]   ;;  %s3314_s20 = scalar_lea.vmem [#allocation18], %s3473_s25  ;;  %s3515_s10 = sld [smem:[#allocation34_spill]] }
 0x11a   : > { %2052 = vmatprep.subr.bf16.mxu0 %v2794_v0  ;;  %2072 = vmatprep.subr.bf16.mxu1 %v2794_v0  ;;  %v2361_v12 = vld [vmem:[#allocation7 + $0x20] sm:$0xff]   ;;  %v2355_v13 = vld [vmem:[#allocation5 + $0x38] sm:$0xff]   ;;  %v2362_v14 = vld [vmem:[#allocation7 + $0x28] sm:$0xff]   ;;  %s3516_s22 = sld [smem:[#allocation35_spill]]  ;;  %s3472_s18 = sshll.u32 %s2916_s1, 8 }
 0x11b   : > { %v2356_v15 = vld [vmem:[%s3216_s19] sm:$0xff]   ;;  %v2365_v18 = vld [vmem:[#allocation8] sm:$0xff]   ;;  %v2366_v19 = vld [vmem:[#allocation8 + $0x8] sm:$0xff]   ;;  %s3513_s19 = sld [smem:[#allocation32_spill]]  ;;  %s3517_s17 = sld [smem:[#allocation38_spill]] }
 0x11c   : > { %v2363_v16 = vld [vmem:[#allocation7 + $0x30] sm:$0xff]   ;;  %v2364_v17 = vld [vmem:[#allocation7 + $0x38] sm:$0xff]   ;;  %v2369_v22 = vld [vmem:[#allocation8 + $0x20] sm:$0xff]   ;;  %p3518_p1 = scmp.ne.s32.totalorder %s3496_s23, 0  ;;  %s2796_s26 = smov [#allocation18]  }
 0x11d   : > { %2053 = vmatpush3.bf16.msra.mxu0 %v2349_v2  ;;  %2073 = vmatpush3.bf16.msra.mxu1 %v2358_v6  ;;  %v2367_v20 = vld [vmem:[#allocation8 + $0x10] sm:$0xff]   ;;  %v2368_v21 = vld [vmem:[#allocation8 + $0x18] sm:$0xff]   ;;  %v2370_v23 = vld [vmem:[#allocation8 + $0x28] sm:$0xff]  }
 0x11e   : > { %2054 = vmatprep.subr.bf16.mxu0 %v2794_v0  ;;  %2074 = vmatprep.subr.bf16.mxu1 %v2794_v0  ;;  %v1894_v24 = vld [vmem:[%s3511_s14] ss:$0 sm:$0xff]  ;;  %v2372_v35 = vld [vmem:[#allocation8 + $0x38] sm:$0xff]   ;;  %v2373_v36 = vld [vmem:[#allocation10] sm:$0xff]  }
 0x11f   : > { %v2371_v34 = vld [vmem:[#allocation8 + $0x30] sm:$0xff]   ;;  %v2374_v37 = vld [vmem:[#allocation10 + $0x8] sm:$0xff]   ;;  %v2376_v39 = vld [vmem:[#allocation10 + $0x18] sm:$0xff]  }
 0x120   : > { %v2375_v38 = vld [vmem:[#allocation10 + $0x10] sm:$0xff]   ;;  %v2377_v40 = vld [vmem:[#allocation10 + $0x20] sm:$0xff]   ;;  %v2378_v41 = vld [vmem:[#allocation10 + $0x28] sm:$0xff]  }
 0x121   : > { %2055 = vmatpush3.bf16.msra.mxu0 %v2350_v3  ;;  %2075 = vmatpush3.bf16.msra.mxu1 %v2359_v8  ;;  %v1904_v42 = vld [vmem:[%s3447_s4] ss:$0 sm:$0xff]  ;;  %v2380_v53 = vld [vmem:[#allocation10 + $0x38] sm:$0xff]   ;;  %v2381_v54 = vld [vmem:[#allocation11] sm:$0xff]   ;;  %s3356_s24 = scalar_lea.hbm %s3517_s17, %s3472_s18 }
 0x122   : > { %2056 = vmatprep.subr.bf16.mxu0 %v2794_v0  ;;  %2076 = vmatprep.subr.bf16.mxu1 %v2794_v0  ;;  %v2379_v52 = vld [vmem:[#allocation10 + $0x30] sm:$0xff]   ;;  %v2382_v55 = vld [vmem:[#allocation11 + $0x8] sm:$0xff]   ;;  %v2384_v57 = vld [vmem:[#allocation11 + $0x18] sm:$0xff]  }
 0x123   : > { %v2383_v56 = vld [vmem:[#allocation11 + $0x10] sm:$0xff]   ;;  %v2385_v58 = vld [vmem:[#allocation11 + $0x20] sm:$0xff]   ;;  %v2386_v59 = vld [vmem:[#allocation11 + $0x28] sm:$0xff]  }
 0x124   : > { %v1913_v60 = vld [vmem:[%s3512_s12] ss:$0 sm:$0xff]  ;;  %v2388_v8 = vld [vmem:[#allocation11 + $0x38] sm:$0xff]  }
 0x125   : > { %2057 = vmatpush3.bf16.msra.mxu0 %v2351_v5  ;;  %2077 = vmatpush3.bf16.msra.mxu1 %v2360_v10  ;;  %v2390_v10 = vld [vmem:[#allocation13 + $0x8] sm:$0xff]  }
 0x126   : > { %2058 = vmatprep.subr.bf16.mxu0 %v2794_v0  ;;  %2078 = vmatprep.subr.bf16.mxu1 %v2794_v0 }
 0x129   : > { %2059 = vmatpush3.bf16.msra.mxu0 %v2352_v7  ;;  %2079 = vmatpush3.bf16.msra.mxu1 %v2361_v12  ;;  %v2387_v7 = vld [vmem:[#allocation11 + $0x30] sm:$0xff]   ;;  %v2392_v12 = vld [vmem:[#allocation13 + $0x18] sm:$0xff]  }
 0x12a   : > { %2060 = vmatprep.subr.bf16.mxu0 %v2794_v0  ;;  %2080 = vmatprep.subr.bf16.mxu1 %v2794_v0 }
 0x12d   : > { %2061 = vmatpush3.bf16.msra.mxu0 %v2353_v9  ;;  %2081 = vmatpush3.bf16.msra.mxu1 %v2362_v14  ;;  %v2389_v9 = vld [vmem:[#allocation13] sm:$0xff]   ;;  %v2394_v14 = vld [vmem:[#allocation13 + $0x28] sm:$0xff]  }
 0x12e   : > { %2062 = vmatprep.subr.bf16.mxu0 %v2794_v0  ;;  %2082 = vmatprep.subr.bf16.mxu1 %v2794_v0 }
 0x131   : > { %2063 = vmatpush3.bf16.msra.mxu0 %v2354_v11  ;;  %2083 = vmatpush3.bf16.msra.mxu1 %v2363_v16  ;;  %v2391_v11 = vld [vmem:[#allocation13 + $0x10] sm:$0xff]  }
 0x132   : > { %2064 = vmatprep.subr.bf16.mxu0 %v2794_v0  ;;  %2084 = vmatprep.subr.bf16.mxu1 %v2794_v0 }
 0x135   : > { %2065 = vmatpush3.bf16.msra.mxu0 %v2355_v13  ;;  %2085 = vmatpush3.bf16.msra.mxu1 %v2364_v17  ;;  %v2393_v13 = vld [vmem:[#allocation13 + $0x20] sm:$0xff]  }
 0x136   : > { %2090 = vmatprep.subr.bf16.mxu0 %v2794_v0  ;;  %2110 = vmatprep.subr.bf16.mxu1 %v2794_v0 }
 0x138   : > { %2067 = vmatmul.mubr.bf16.vlgmr.msra.gmra.mrb[0].mxu0 %v2356_v15  ;;  %v1922_v15 = vld [vmem:[%s3513_s19] ss:$0 sm:$0xff]  ;;  %s1687_s19 = sshll.u32 %s3314_s20, 4  ;;  %s3349_s19 = int_to_ptr.vmem [resolvable:$true] %s1687_s19 }
 0x139   : > { %2106 = vmatprep.mubr.msk.bf16.mxu0 %vm2795_vm0, %v2794_v0  ;;  %2091 = vmatpush3.bf16.msra.mxu0 %v2365_v18  ;;  %s2667_s12 = scalar_lea.vmem %s3349_s19, 256 }
 0x13a   : > { %2092 = vmatprep.subr.bf16.mxu0 %v2794_v0  ;;  %p2668_p12 = scmp.ne.s32.totalorder %s3349_s19, %s2667_s12 }
 0x13c   : > { %p2669_p13 = pnand %p2668_p12, %p3518_p1 }
 0x13d   : > { %2093 = vmatpush3.bf16.msra.mxu0 %v2366_v19 }
 0x13e   : > { %2094 = vmatprep.subr.bf16.mxu0 %v2794_v0  ;;  %p2670_p0 = pneg %p2669_p13 }
 0x141   : > { %2095 = vmatpush3.bf16.msra.mxu0 %v2367_v20 }
 0x142   : > { %2096 = vmatprep.subr.bf16.mxu0 %v2794_v0 }
 0x145   : > { %2097 = vmatpush3.bf16.msra.mxu0 %v2368_v21 }
 0x146   : > { %2098 = vmatprep.subr.bf16.mxu0 %v2794_v0 }
 0x149   : > { %2099 = vmatpush3.bf16.msra.mxu0 %v2369_v22 }
 0x14a   : > { %2100 = vmatprep.subr.bf16.mxu0 %v2794_v0 }
 0x14d   : > { %2101 = vmatpush3.bf16.msra.mxu0 %v2370_v23  ;;  %v2395_v23 = vld [vmem:[#allocation13 + $0x30] sm:$0xff]  }
 0x14e   : > { %2102 = vmatprep.subr.bf16.mxu0 %v2794_v0 }
 0x151   : > { %2103 = vmatpush3.bf16.msra.mxu0 %v2371_v34 }
 0x152   : > { %2104 = vmatprep.subr.bf16.mxu0 %v2794_v0 }
 0x155   : > { %2105 = vmatpush3.bf16.msra.mxu0 %v2372_v35 }
 0x156   : > { %2130 = vmatprep.subr.bf16.mxu0 %v2794_v0 }
 0x20b   : > { %v838_v25 = vpop.f32.mrb[0].mxu0 }
 0x20c   : > { %v839_v26 = vadd.f32 %v1894_v24, %v838_v25  ;;  %v2068_v27 = vpop.f32.mrb[1].mxu0  ;;  %v2397_v25 = vld [vmem:[#allocation14] sm:$0xff]  }
 0x20d   : > { %v841_v28 = vpop.f32.mrb[2].mxu0  ;;  %v2399_v27 = vld [vmem:[#allocation14 + $0x10] sm:$0xff]  }
 0x20e   : > { %v842_v29 = vadd.f32 %v1894_v24, %v841_v28  ;;  %v2069_v30 = vpop.f32.mrb[3].mxu0  ;;  %v845_v31 = vmax.f32 %v839_v26, 0.0  ;;  %v2396_v24 = vld [vmem:[#allocation13 + $0x38] sm:$0xff]   ;;  %v2398_v26 = vld [vmem:[#allocation14 + $0x8] sm:$0xff]  }
 0x20f   : > { %v2400_v28 = vld [vmem:[#allocation14 + $0x18] sm:$0xff]   ;;  %v2402_v30 = vld [vmem:[#allocation14 + $0x28] sm:$0xff]  }
 0x210   : > { %v846_v32 = vmax.f32 %v842_v29, 0.0  ;;  %v2401_v29 = vld [vmem:[#allocation14 + $0x20] sm:$0xff]  }
 0x212   : > { %v848_v33 = vpack.c.bf16 %v846_v32, %v845_v31  ;;  %v1931_v31 = vld [vmem:[%s3514_s0] ss:$0 sm:$0xff] }
 0x214   : > { %2087 = vmatmul.mubr.bf16.vlgmr.msra.gmra.mrb[0].mxu1 %v848_v33 }
 0x215   : > { %2126 = vmatprep.mubr.msk.bf16.mxu1 %vm2795_vm0, %v2794_v0  ;;  %2111 = vmatpush3.bf16.msra.mxu1 %v2373_v36 }
 0x216   : > { %2112 = vmatprep.subr.bf16.mxu1 %v2794_v0 }
 0x219   : > { %2113 = vmatpush3.bf16.msra.mxu1 %v2374_v37 }
 0x21a   : > { %2114 = vmatprep.subr.bf16.mxu1 %v2794_v0 }
 0x21d   : > { %2115 = vmatpush3.bf16.msra.mxu1 %v2375_v38 }
 0x21e   : > { %2116 = vmatprep.subr.bf16.mxu1 %v2794_v0 }
 0x221   : > { %2117 = vmatpush3.bf16.msra.mxu1 %v2376_v39 }
 0x222   : > { %2118 = vmatprep.subr.bf16.mxu1 %v2794_v0 }
 0x225   : > { %2119 = vmatpush3.bf16.msra.mxu1 %v2377_v40 }
 0x226   : > { %2120 = vmatprep.subr.bf16.mxu1 %v2794_v0 }
 0x229   : > { %2121 = vmatpush3.bf16.msra.mxu1 %v2378_v41  ;;  %v2403_v41 = vld [vmem:[#allocation14 + $0x30] sm:$0xff]  }
 0x22a   : > { %2122 = vmatprep.subr.bf16.mxu1 %v2794_v0 }
 0x22d   : > { %2123 = vmatpush3.bf16.msra.mxu1 %v2379_v52 }
 0x22e   : > { %2124 = vmatprep.subr.bf16.mxu1 %v2794_v0 }
 0x231   : > { %2125 = vmatpush3.bf16.msra.mxu1 %v2380_v53 }
 0x232   : > { %2150 = vmatprep.subr.bf16.mxu1 %v2794_v0 }
 0x2e7   : > { %v953_v43 = vpop.f32.mrb[0].mxu1 }
 0x2e8   : > { %v954_v44 = vadd.f32 %v1904_v42, %v953_v43  ;;  %v2088_v45 = vpop.f32.mrb[1].mxu1  ;;  %v2405_v43 = vld [vmem:[#allocation16] sm:$0xff]  }
 0x2e9   : > { %v956_v46 = vpop.f32.mrb[2].mxu1  ;;  %v2407_v45 = vld [vmem:[#allocation16 + $0x10] sm:$0xff]  }
 0x2ea   : > { %v957_v47 = vadd.f32 %v1904_v42, %v956_v46  ;;  %v2089_v48 = vpop.f32.mrb[3].mxu1  ;;  %v960_v49 = vmax.f32 %v954_v44, 0.0  ;;  %v2404_v42 = vld [vmem:[#allocation14 + $0x38] sm:$0xff]   ;;  %v2406_v44 = vld [vmem:[#allocation16 + $0x8] sm:$0xff]  }
 0x2eb   : > { %v2408_v46 = vld [vmem:[#allocation16 + $0x18] sm:$0xff]   ;;  %v2410_v48 = vld [vmem:[#allocation16 + $0x28] sm:$0xff]  }
 0x2ec   : > { %v961_v50 = vmax.f32 %v957_v47, 0.0  ;;  %v2409_v47 = vld [vmem:[#allocation16 + $0x20] sm:$0xff]  }
 0x2ee   : > { %v963_v51 = vpack.c.bf16 %v961_v50, %v960_v49  ;;  %v1940_v49 = vld [vmem:[%s3515_s10] ss:$0 sm:$0xff]  ;;  %s1658_s10 = scalar_lea.sflag [#allocation19], %s3212_s2 }
 0x2f0   : > { %2107 = vmatmul.mubr.bf16.vlgmr.msra.gmra.mrb[4].mxu0 %v963_v51 }
 0x2f1   : > { %2146 = vmatprep.mubr.msk.bf16.mxu0 %vm2795_vm0, %v2794_v0  ;;  %2131 = vmatpush3.bf16.msra.mxu0 %v2381_v54 }
 0x2f2   : > { %2132 = vmatprep.subr.bf16.mxu0 %v2794_v0 }
 0x2f5   : > { %2133 = vmatpush3.bf16.msra.mxu0 %v2382_v55 }
 0x2f6   : > { %2134 = vmatprep.subr.bf16.mxu0 %v2794_v0 }
 0x2f9   : > { %2135 = vmatpush3.bf16.msra.mxu0 %v2383_v56 }
 0x2fa   : > { %2136 = vmatprep.subr.bf16.mxu0 %v2794_v0 }
 0x2fd   : > { %2137 = vmatpush3.bf16.msra.mxu0 %v2384_v57 }
 0x2fe   : > { %2138 = vmatprep.subr.bf16.mxu0 %v2794_v0 }
 0x301   : > { %2139 = vmatpush3.bf16.msra.mxu0 %v2385_v58 }
 0x302   : > { %2140 = vmatprep.subr.bf16.mxu0 %v2794_v0 }
 0x305   : > { %2141 = vmatpush3.bf16.msra.mxu0 %v2386_v59  ;;  %v2411_v59 = vld [vmem:[#allocation16 + $0x30] sm:$0xff]  }
 0x306   : > { %2142 = vmatprep.subr.bf16.mxu0 %v2794_v0 }
 0x309   : > { %2143 = vmatpush3.bf16.msra.mxu0 %v2387_v7 }
 0x30a   : > { %2144 = vmatprep.subr.bf16.mxu0 %v2794_v0 }
 0x30d   : > { %2145 = vmatpush3.bf16.msra.mxu0 %v2388_v8 }
 0x30e   : > { %2170 = vmatprep.subr.bf16.mxu0 %v2794_v0 }
 0x3c3   : > { %v1068_v61 = vpop.f32.mrb[4].mxu0 }
 0x3c4   : > { %v1069_v62 = vadd.f32 %v1913_v60, %v1068_v61  ;;  %v2108_v63 = vpop.f32.mrb[5].mxu0  ;;  %v1949_v61 = vld [vmem:[%s3516_s22] ss:$0 sm:$0xff] }
 0x3c5   : > { %v1071_v1 = vpop.f32.mrb[6].mxu0 }
 0x3c6   : > { %v1072_v2 = vadd.f32 %v1913_v60, %v1071_v1  ;;  %v2109_v3 = vpop.f32.mrb[7].mxu0  ;;  %v1075_v4 = vmax.f32 %v1069_v62, 0.0  ;;  %v2412_v60 = vld [vmem:[#allocation16 + $0x38] sm:$0xff]  }
 0x3c8   : > { %v1076_v5 = vmax.f32 %v1072_v2, 0.0 }
 0x3ca   : > { %v1078_v6 = vpack.c.bf16 %v1076_v5, %v1075_v4 }
 0x3cc   : > { %2127 = vmatmul.mubr.bf16.vlgmr.msra.gmra.mrb[4].mxu1 %v1078_v6 }
 0x3cd   : > { %2166 = vmatprep.mubr.msk.bf16.mxu1 %vm2795_vm0, %v2794_v0  ;;  %2151 = vmatpush3.bf16.msra.mxu1 %v2389_v9 }
 0x3ce   : > { %2152 = vmatprep.subr.bf16.mxu1 %v2794_v0 }
 0x3d1   : > { %2153 = vmatpush3.bf16.msra.mxu1 %v2390_v10 }
 0x3d2   : > { %2154 = vmatprep.subr.bf16.mxu1 %v2794_v0 }
 0x3d5   : > { %2155 = vmatpush3.bf16.msra.mxu1 %v2391_v11 }
 0x3d6   : > { %2156 = vmatprep.subr.bf16.mxu1 %v2794_v0 }
 0x3d9   : > { %2157 = vmatpush3.bf16.msra.mxu1 %v2392_v12 }
 0x3da   : > { %2158 = vmatprep.subr.bf16.mxu1 %v2794_v0 }
 0x3dd   : > { %2159 = vmatpush3.bf16.msra.mxu1 %v2393_v13 }
 0x3de   : > { %2160 = vmatprep.subr.bf16.mxu1 %v2794_v0 }
 0x3e1   : > { %2161 = vmatpush3.bf16.msra.mxu1 %v2394_v14 }
 0x3e2   : > { %2162 = vmatprep.subr.bf16.mxu1 %v2794_v0 }
 0x3e5   : > { %2163 = vmatpush3.bf16.msra.mxu1 %v2395_v23 }
 0x3e6   : > { %2164 = vmatprep.subr.bf16.mxu1 %v2794_v0 }
 0x3e9   : > { %2165 = vmatpush3.bf16.msra.mxu1 %v2396_v24 }
 0x3ea   : > { %2190 = vmatprep.subr.bf16.mxu1 %v2794_v0 }
 0x49f   : > { %v1183_v16 = vpop.f32.mrb[4].mxu1 }
 0x4a0   : > { %v1184_v17 = vadd.f32 %v1922_v15, %v1183_v16  ;;  %v2128_v18 = vpop.f32.mrb[5].mxu1 }
 0x4a1   : > { %v1186_v19 = vpop.f32.mrb[6].mxu1 }
 0x4a2   : > { %1650 = vst [vmem:[%s3314_s20] sm:$0xff] %v1184_v17  ;;  %v1187_v20 = vadd.f32 %v1922_v15, %v1186_v19  ;;  %v2129_v21 = vpop.f32.mrb[7].mxu1 }
 0x4a4   : > { %v1191_v22 = vpack.c.bf16 %v1187_v20, %v1184_v17  ;;  %1651 = vst [vmem:[%s3314_s20 + $0x8] sm:$0xff] %v1187_v20  ;;  %s2671_s20 = sshll.u32 %s2796_s26, 4  ;;  %s2672_s20 = int_to_ptr.vmem [resolvable:$false] %s2671_s20 }
 0x4a5   : > { %s2673_s22 = scalar_lea.vmem %s2672_s20, 512  ;;  %p2674_p2 = scmp.lt.s32.totalorder %s3349_s19, %s2672_s20 }
 0x4a6   : > { %2147 = vmatmul.mubr.bf16.vlgmr.msra.gmra.mrb[8].mxu0 %v1191_v22  ;;  %p2675_p7 = scmp.lt.s32.totalorder %s2673_s22, %s2667_s12 }
 0x4a7   : > { %2186 = vmatprep.mubr.msk.bf16.mxu0 %vm2795_vm0, %v2794_v0  ;;  %2171 = vmatpush3.bf16.msra.mxu0 %v2397_v25 }
 0x4a8   : > { %2172 = vmatprep.subr.bf16.mxu0 %v2794_v0  ;;  %p2676_p9 = por %p2675_p7, %p2674_p2 }
 0x4aa   : > { %p2677_p10 = pnand %p2676_p9, %p2670_p0 }
 0x4ab   : > { %2173 = vmatpush3.bf16.msra.mxu0 %v2398_v26 }
 0x4ac   : > { %2174 = vmatprep.subr.bf16.mxu0 %v2794_v0 }
 0x4af   : > { %2175 = vmatpush3.bf16.msra.mxu0 %v2399_v27 }
 0x4b0   : > { %2176 = vmatprep.subr.bf16.mxu0 %v2794_v0 }
 0x4b3   : > { %2177 = vmatpush3.bf16.msra.mxu0 %v2400_v28 }
 0x4b4   : > { %2178 = vmatprep.subr.bf16.mxu0 %v2794_v0 }
 0x4b7   : > { %2179 = vmatpush3.bf16.msra.mxu0 %v2401_v29 }
 0x4b8   : > { %2180 = vmatprep.subr.bf16.mxu0 %v2794_v0 }
 0x4bb   : > { %2181 = vmatpush3.bf16.msra.mxu0 %v2402_v30 }
 0x4bc   : > { %2182 = vmatprep.subr.bf16.mxu0 %v2794_v0 }
 0x4bf   : > { %2183 = vmatpush3.bf16.msra.mxu0 %v2403_v41 }
 0x4c0   : > { %2184 = vmatprep.subr.bf16.mxu0 %v2794_v0 }
 0x4c3   : > { %2185 = vmatpush3.bf16.msra.mxu0 %v2404_v42 }
 0x579   : > { %v1296_v32 = vpop.f32.mrb[8].mxu0 }
 0x57a   : > { %v1297_v33 = vadd.f32 %v1931_v31, %v1296_v32  ;;  %v2148_v34 = vpop.f32.mrb[9].mxu0 }
 0x57b   : > { %v1299_v35 = vpop.f32.mrb[10].mxu0 }
 0x57c   : > { %v1300_v36 = vadd.f32 %v1931_v31, %v1299_v35  ;;  %v2149_v37 = vpop.f32.mrb[11].mxu0  ;;  %v1303_v38 = vmax.f32 %v1297_v33, 0.0 }
 0x57e   : > { %v1304_v39 = vmax.f32 %v1300_v36, 0.0 }
 0x580   : > { %v1306_v40 = vpack.c.bf16 %v1304_v39, %v1303_v38 }
 0x582   : > { %2167 = vmatmul.mubr.bf16.vlgmr.msra.gmra.mrb[8].mxu1 %v1306_v40 }
 0x583   : > { %2206 = vmatprep.mubr.msk.bf16.mxu1 %vm2795_vm0, %v2794_v0  ;;  %2191 = vmatpush3.bf16.msra.mxu1 %v2405_v43 }
 0x584   : > { %2192 = vmatprep.subr.bf16.mxu1 %v2794_v0 }
 0x587   : > { %2193 = vmatpush3.bf16.msra.mxu1 %v2406_v44 }
 0x588   : > { %2194 = vmatprep.subr.bf16.mxu1 %v2794_v0 }
 0x58b   : > { %2195 = vmatpush3.bf16.msra.mxu1 %v2407_v45 }
 0x58c   : > { %2196 = vmatprep.subr.bf16.mxu1 %v2794_v0 }
 0x58f   : > { %2197 = vmatpush3.bf16.msra.mxu1 %v2408_v46 }
 0x590   : > { %2198 = vmatprep.subr.bf16.mxu1 %v2794_v0 }
 0x593   : > { %2199 = vmatpush3.bf16.msra.mxu1 %v2409_v47 }
 0x594   : > { %2200 = vmatprep.subr.bf16.mxu1 %v2794_v0 }
 0x597   : > { %2201 = vmatpush3.bf16.msra.mxu1 %v2410_v48 }
 0x598   : > { %2202 = vmatprep.subr.bf16.mxu1 %v2794_v0 }
 0x59b   : > { %2203 = vmatpush3.bf16.msra.mxu1 %v2411_v59 }
 0x59c   : > { %2204 = vmatprep.subr.bf16.mxu1 %v2794_v0 }
 0x59f   : > { %2205 = vmatpush3.bf16.msra.mxu1 %v2412_v60 }
 0x655   : > { %v1411_v50 = vpop.f32.mrb[8].mxu1 }
 0x656   : > { %v1412_v51 = vadd.f32 %v1940_v49, %v1411_v50  ;;  %v2168_v52 = vpop.f32.mrb[9].mxu1 }
 0x657   : > { %v1414_v53 = vpop.f32.mrb[10].mxu1 }
 0x658   : > { %v1415_v54 = vadd.f32 %v1940_v49, %v1414_v53  ;;  %v2169_v55 = vpop.f32.mrb[11].mxu1  ;;  %v1418_v56 = vmax.f32 %v1412_v51, 0.0 }
 0x65a   : > { %v1419_v57 = vmax.f32 %v1415_v54, 0.0 }
 0x65c   : > { %v1421_v58 = vpack.c.bf16 %v1419_v57, %v1418_v56 }
 0x65e   : > { %2187 = vmatmul.mubr.bf16.vlgmr.msra.gmra.mrb[12].mxu0 %v1421_v58 }
 0x731   : > { %v1526_v62 = vpop.f32.mrb[12].mxu0 }
 0x732   : > { %v1527_v63 = vadd.f32 %v1949_v61, %v1526_v62  ;;  %v2188_v1 = vpop.f32.mrb[13].mxu0 }
 0x733   : > { %v1529_v2 = vpop.f32.mrb[14].mxu0 }
 0x734   : > { %v1530_v3 = vadd.f32 %v1949_v61, %v1529_v2  ;;  %v2189_v4 = vpop.f32.mrb[15].mxu0  ;;  %v1533_v5 = vmax.f32 %v1527_v63, 0.0 }
 0x736   : > { %v1534_v6 = vmax.f32 %v1530_v3, 0.0 }
 0x738   : > { %v1536_v7 = vpack.c.bf16 %v1534_v6, %v1533_v5 }
 0x73a   : > { %2207 = vmatmul.mubr.bf16.vlgmr.msra.gmra.mrb[12].mxu1 %v1536_v7 }
 0x73b   : > { %2680 = shalt.err (!%p2677_p10)
}
 0x73c   : > { %s2681_s14 = scalar_lea.hbm %s3356_s24, 256  ;;  %s2685_s26 = scalar_lea.hbm %s3517_s17, 1024 }
 0x73d   : > { %p2682_p11 = scmp.ne.s32.totalorder %s3356_s24, %s2681_s14  ;;  %p2686_p6 = scmp.lt.u32.totalorder %s3356_s24, %s3517_s17 }
 0x73e   : > { %p2687_p5 = scmp.lt.u32.totalorder %s2685_s26, %s2681_s14  ;;  %p2689_p12 = scmp.lt.u32.totalorder %s2681_s14, %s3356_s24 }
 0x73f   : > { %p2683_p3 = pnand %p2682_p11, %p3518_p1 }
 0x740   : > { %p2688_p8 = por %p2687_p5, %p2686_p6 }
 0x741   : > { %p2684_p4 = pneg %p2683_p3 }
 0x742   : > { %p2690_p13 = por %p2689_p12, %p2688_p8 }
 0x744   : > { %p2691_p0 = pnand %p2690_p13, %p2684_p4 }
 0x746   : > { %2694 = shalt.err (!%p2691_p0)
}
 0x747   : > { %s3474_s12 = smov 128   ;;  %s3475_s18 = smov 8  }
 0x748   : > { %2245 = dma.vmem_to_hbm [thread:$0]  (%p3518_p1), %s3349_s19, 256, %s3356_s24, %s1658_s10, %s3474_s12, %s3474_s12, %s3475_s18  }
 0x749   : > { %s3519_s14 = sld [smem:[#allocation36_spill]]  ;;  %s3520_s0 = sshll.u32 %s3212_s2, 4 }
 0x74a   : > { %s713_s26 = scalar_lea.vmem [#allocation17], %s3520_s0  ;;  %s3521_s19 = sshll.u32 %s2916_s1, 8 }
 0x74b   : > { %s1671_s20 = sshll.u32 %s713_s26, 4  ;;  %s3522_s25 = sld [smem:[#allocation37_spill]]  ;;  %s3390_s20 = int_to_ptr.vmem [resolvable:$true] %s1671_s20 }
 0x74c   : > { %s2695_s0 = scalar_lea.vmem %s3390_s20, 256  ;;  %s2799_s12 = smov [#allocation17]  }
 0x74d   : > { %p2696_p2 = scmp.ne.s32.totalorder %s3390_s20, %s2695_s0  ;;  %s2699_s18 = sshll.u32 %s2799_s12, 4  ;;  %s2700_s18 = int_to_ptr.vmem [resolvable:$false] %s2699_s18 }
 0x74e   : > { %s2701_s3 = scalar_lea.vmem %s2700_s18, 512  ;;  %p2702_p10 = scmp.lt.s32.totalorder %s3390_s20, %s2700_s18 }
 0x74f   : > { %v1958_v0 = vld [vmem:[%s3519_s14] ss:$0 sm:$0xff]  ;;  %s1653_s14 = scalar_lea.sflag [#allocation4], %s3212_s2  ;;  %p2697_p7 = pnand %p2696_p2, %p3518_p1 }
 0x750   : > { %p2703_p11 = scmp.lt.s32.totalorder %s2701_s3, %s2695_s0 }
 0x751   : > { %s3397_s22 = scalar_lea.hbm %s3522_s25, %s3521_s19  ;;  %p2698_p9 = pneg %p2697_p7 }
 0x752   : > { %p2704_p3 = por %p2703_p11, %p2702_p10 }
 0x754   : > { %p2705_p4 = pnand %p2704_p3, %p2698_p9 }
 0x80d   : > { %v1641_v8 = vpop.f32.mrb[12].mxu1 }
 0x80e   : > { %v1642_v9 = vadd.f32 %v1958_v0, %v1641_v8  ;;  %v2208_v10 = vpop.f32.mrb[13].mxu1 }
 0x80f   : > { %v1644_v11 = vpop.f32.mrb[14].mxu1 }
 0x810   : > { %1648 = vst [vmem:[%s713_s26] sm:$0xff] %v1642_v9  ;;  %v1645_v12 = vadd.f32 %v1958_v0, %v1644_v11  ;;  %v2209_v13 = vpop.f32.mrb[15].mxu1 }
 0x812   : > { %1649 = vst [vmem:[%s713_s26 + $0x8] sm:$0xff] %v1645_v12 }
 0x813   : > { %2708 = shalt.err (!%p2705_p4)
}
 0x814   : > { %s2709_s1 = scalar_lea.hbm %s3397_s22, 256  ;;  %s2713_s12 = scalar_lea.hbm %s3522_s25, 1024 }
 0x815   : > { %p2710_p6 = scmp.ne.s32.totalorder %s3397_s22, %s2709_s1  ;;  %p2714_p12 = scmp.lt.u32.totalorder %s3397_s22, %s3522_s25 }
 0x816   : > { %p2715_p13 = scmp.lt.u32.totalorder %s2713_s12, %s2709_s1  ;;  %p2717_p2 = scmp.lt.u32.totalorder %s2709_s1, %s3397_s22 }
 0x817   : > { %p2711_p5 = pnand %p2710_p6, %p3518_p1 }
 0x818   : > { %p2716_p0 = por %p2715_p13, %p2714_p12 }
 0x819   : > { %p2712_p8 = pneg %p2711_p5 }
 0x81a   : > { %p2718_p7 = por %p2717_p2, %p2716_p0 }
 0x81c   : > { %p2719_p9 = pnand %p2718_p7, %p2712_p8 }
 0x81e   : > { %2722 = shalt.err (!%p2719_p9)
}
 0x81f   : > { %s3523_s3 = smov 8   ;;  %s3524_s10 = smov 128  }
 0x820   : > { %2244 = dma.vmem_to_hbm [thread:$0]  (%p3518_p1), %s3390_s20, 256, %s3397_s22, %s1653_s14, %s3524_s10, %s3524_s10, %s3523_s3  }
 0x821 PF: > { %p2301_p10 = scmp.ge.s32.totalorder %s2781_s30, 2  ;;  %s1702_s0 = sand.u32 1, %s2769_s27  }
 0x822   : > { %p3525_p11 = scmp.ne.s32.totalorder %s3497_s16, 0  ;;  %s1703_s1 = scalar_lea.sflag [#allocation4], %s1702_s0 }
 0x824   : > { %p2278_p3 = pnand %p2301_p10, %p3525_p11 }
 0x826   : > { %2760 = dma.done.wait (!%p2278_p3), %s1703_s1, 256  }
 0x827   : > { %2762 = vsyncadd (!%p2278_p3), %s1703_s1, 4294967040  ;;  %s1712_s23 = scalar_lea.sflag [#allocation19], %s1702_s0 }
 0x828   : > { %2764 = dma.done.wait (!%p2278_p3), %s1712_s23, 256  }
 0x829   : > { %2766 = vsyncadd (!%p2278_p3), %s1712_s23, 4294967040  ;;  %p39_p1 = scmp.ge.s32.totalorder %s3130_s21, 6   ;;  %s3526_s27 = smov %s2773_s28 }
 0x82a   : > { %s3527_s28 = smov %s2777_s29  ;;  %s3528_s29 = smov %s3141_s8 }
 0x82b   : > { %s3529_s30 = smov %s3130_s21  ;;  %41 = sbr.rel (!%p39_p1) target bundleno = 24 (0x18), region = 182 }
 0x832   :  { %1717 = vsyncpa [#allocation3], 1 }
 0x833   :  { %1719 = vsyncpa [#allocation3 + $0x1], 1 }
 0x834   :  { %1720 = vsyncpa [#allocation6], 1 }
 0x835   :  { %1721 = vsyncpa [#allocation9], 1 }
 0x836   :  { %1722 = vsyncpa [#allocation12], 1 }
 0x837   :  { %1723 = vsyncpa [#allocation15], 1 }
 0x838   :  { %1724 = vsyncpa [#allocation4], 1 }
 0x839   :  { %1726 = vsyncpa [#allocation4 + $0x1], 1 }
 0x83a   :  { %1727 = vsyncpa [#allocation19], 1 }
 0x83b   :  { %1729 = vsyncpa [#allocation19 + $0x1], 1 }

</bundles_post_ra>
